<compile_context>
chip_gen: v7x
topology: tpu7x:2x2x1
jax: 0.10.0
libtpu: 0.0.40
codegen_flags: <defaults>
</compile_context>

<pallas_src>
import functools

import jax
import jax.numpy as jnp
from jax.experimental import pallas as pl
from jax.experimental.pallas import tpu as pltpu

_LANES = 128
_SUBLANES = 8
_NEG_INF = -1e30  # finite "-inf" for padded tag lanes (never wins max, exp()->0)

_VMEM_BUDGET = 12 * 1024 * 1024          # conservative across v5e/v6e/v7x
_MAX_BLOCK_BYTES = 4 * 1024 * 1024       # per H input block (single buffer)
_MIN_BLOCK_BYTES = 512 * 1024
_MAX_PACKED_WEIGHT_BYTES = 4 * 1024 * 1024  # keep resident block-diag weight small


def _round_up(x, m):
    return ((x + m - 1) // m) * m


def _next_pow2(x):
    p = 1
    while p < x:
        p *= 2
    return p


# --------------------------------------------------------------------------
# Kernels
# --------------------------------------------------------------------------
def _indp_packed_kernel(h_ref, w_ref, b_ref, out_ref, *, seg, use_bf16):
    """Lane-packed kernel: P = 128 // seg rows per 128-lane output row.

    h_ref:   (TG, P*D)   -- P consecutive rows of H, concatenated along lanes
    w_ref:   (P*D, 128)  -- block-diagonal weight (P copies of (D, seg))
    b_ref:   (1, 128)    -- bias tiled P times (padded lanes = -1e30)
    out_ref: (TG, 128)   -- lanes [j*seg, (j+1)*seg) hold log-probs of row j
    """
    h = h_ref[...]
    w = w_ref[...]
    if use_bf16:
        h = h.astype(jnp.bfloat16)
        w = w.astype(jnp.bfloat16)
    scores = jnp.dot(h, w, preferred_element_type=jnp.float32) + b_ref[...]
    lanes = jax.lax.broadcasted_iota(jnp.int32, scores.shape, 1)

    def seg_allreduce(x, op):
        # Butterfly (recursive doubling) all-reduce inside every aligned
        # `seg`-lane segment (seg is a power of two).  Rolls are cyclic over
        # the 128 lanes but the select keeps exactly the partner lane (l ^ k),
        # which stays inside the segment for k < seg.  XLU work is free filler
        # in an HBM-bound kernel.
        k = 1
        while k < seg:
            fwd = pltpu.roll(x, _LANES - k, axis=1)   # value at lane l + k
            bwd = pltpu.roll(x, k, axis=1)            # value at lane l - k
            x = op(x, jnp.where((lanes & k) == 0, fwd, bwd))
            k *= 2
        return x

    seg_max = seg_allreduce(scores, jnp.maximum)        # per-row max (stability)
    shifted = scores - seg_max
    seg_sum = seg_allreduce(jnp.exp(shifted), jnp.add)  # per-row sum(exp)
    out_ref[...] = (shifted - jnp.log(seg_sum)).astype(out_ref.dtype)


def _indp_rows_kernel(h_ref, w_ref, b_ref, out_ref, *, use_bf16):
    """Generic fallback: one H row per sublane row, tag axis on lanes."""
    h = h_ref[...]
    w = w_ref[...]
    if use_bf16:
        h = h.astype(jnp.bfloat16)
        w = w.astype(jnp.bfloat16)
    scores = jnp.dot(h, w, preferred_element_type=jnp.float32) + b_ref[...]
    m = jnp.max(scores, axis=-1, keepdims=True)
    shifted = scores - m
    lse = jnp.log(jnp.sum(jnp.exp(shifted), axis=-1, keepdims=True))
    out_ref[...] = (shifted - lse).astype(out_ref.dtype)


# --------------------------------------------------------------------------
# Tiling helper
# --------------------------------------------------------------------------
def _choose_tile(count, unit_bytes, resident_bytes):
    """Pick a row-tile size (in `count` units, each `unit_bytes` of H).

    Targets ~<=4 MiB per H buffer, keeps the total (2x H + 2x out + resident)
    inside a v5e/v7x-safe VMEM budget, and keeps >=2 grid steps when the input
    is big enough so both v7x TensorCores get work.
    """
    target = max(_MIN_BLOCK_BYTES,
                 min(_MAX_BLOCK_BYTES, (_VMEM_BUDGET - resident_bytes) // 3))
    t = max(_SUBLANES, (target // max(unit_bytes, 1)) // _SUBLANES * _SUBLANES)
    if count > _SUBLANES:
        # >=2 grid steps when possible (v7x has 2 TensorCores on the parallel axis).
        t = min(t, _round_up(pl.cdiv(count, 2), _SUBLANES))
    if t >= count:
        t = count  # single block; full-extent dims need no 8-divisibility
    return t


# --------------------------------------------------------------------------
# Forward
# --------------------------------------------------------------------------
@functools.partial(jax.jit, static_argnames=("use_bf16_matmul",))
def indp_forward(H, params, *, use_bf16_matmul=False):
    """H: (B, S, D) f32; params from prepare_params/init_params -> (B, S, T)."""
    weight_t = params["weight_t"]          # (D, T)
    bias = params["bias"]                  # (T,)
    wp = params.get("wp")                  # (P*D, 128) block-diagonal, or None
    bp = params.get("bp")                  # (1, 128), or None

    B, S, D = H.shape
    T = weight_t.shape[1]
    rows = B * S
    h2d = H.reshape(rows, D)               # free row-major view
    itemsize = H.dtype.itemsize

    compiler_sem = ("parallel",)
    use_packed = wp is not None and rows % (wp.shape[0] // D) == 0

    if use_packed:
        P = wp.shape[0] // D
        Tp = _LANES // P
        groups = rows // P
        hp = h2d.reshape(groups, P * D)    # free view: rows % P == 0, no pad

        w_bytes = wp.size * wp.dtype.itemsize + bp.size * bp.dtype.itemsize
        resident = 2 * w_bytes             # pipeline may double-buffer residents
        tg = _choose_tile(groups, P * D * itemsize, resident)
        grid = pl.cdiv(groups, tg)         # partial last block handled by Pallas

        h_blk = tg * P * D * itemsize
        o_blk = tg * _LANES * itemsize
        vmem_limit = min(max(2 * h_blk + 2 * o_blk + resident + 4 * 1024 * 1024,
                             16 * 1024 * 1024), 64 * 1024 * 1024)
        cost = pl.CostEstimate(
            flops=2 * groups * (P * D) * _LANES,
            transcendentals=2 * groups * _LANES,
            bytes_accessed=(groups * P * D + groups * _LANES) * itemsize + w_bytes,
        )

        out = pl.pallas_call(
            functools.partial(_indp_packed_kernel, seg=Tp, use_bf16=use_bf16_matmul),
            out_shape=jax.ShapeDtypeStruct((groups, _LANES), H.dtype),
            grid_spec=pltpu.PrefetchScalarGridSpec(
                num_scalar_prefetch=0,
                grid=(grid,),
                in_specs=[
                    pl.BlockSpec((tg, P * D), lambda i: (i, 0)),
                    pl.BlockSpec((P * D, _LANES), lambda i: (0, 0)),  # resident
                    pl.BlockSpec((1, _LANES), lambda i: (0, 0)),      # resident
                ],
                out_specs=pl.BlockSpec((tg, _LANES), lambda i: (i, 0)),
            ),
            compiler_params=pltpu.CompilerParams(
                dimension_semantics=compiler_sem,
                vmem_limit_bytes=int(vmem_limit)),
            cost_estimate=cost,
        )(hp, wp, bp)

        lp = out.reshape(rows, Tp)         # free row-major view
        if Tp != T:
            lp = lp[:, :T]                 # small output-side slice only
        return lp.reshape(B, S, T)

    # ---- generic fallback: arbitrary T, ragged rows, no padding of H ----
    b2d = bias.reshape(1, T)
    w_bytes = (D * T + T) * weight_t.dtype.itemsize
    resident = 2 * w_bytes
    tr = _choose_tile(rows, D * itemsize, resident)
    grid = pl.cdiv(rows, tr)               # partial last block handled by Pallas

    h_blk = tr * D * itemsize
    o_blk = tr * T * itemsize
    vmem_limit = min(max(2 * h_blk + 2 * o_blk + resident + 4 * 1024 * 1024,
                         16 * 1024 * 1024), 64 * 1024 * 1024)
    cost = pl.CostEstimate(
        flops=2 * rows * D * T,
        transcendentals=rows * T + rows,
        bytes_accessed=(rows * D + rows * T) * itemsize + w_bytes,
    )

    out = pl.pallas_call(
        functools.partial(_indp_rows_kernel, use_bf16=use_bf16_matmul),
        out_shape=jax.ShapeDtypeStruct((rows, T), H.dtype),
        grid_spec=pltpu.PrefetchScalarGridSpec(
            num_scalar_prefetch=0,
            grid=(grid,),
            in_specs=[
                pl.BlockSpec((tr, D), lambda i: (i, 0)),
                pl.BlockSpec((D, T), lambda i: (0, 0)),   # resident
                pl.BlockSpec((1, T), lambda i: (0, 0)),   # resident
            ],
            out_specs=pl.BlockSpec((tr, T), lambda i: (i, 0)),
        ),
        compiler_params=pltpu.CompilerParams(
            dimension_semantics=compiler_sem,
            vmem_limit_bytes=int(vmem_limit)),
        cost_estimate=cost,
    )(h2d, weight_t, b2d)
    return out.reshape(B, S, T)


# --------------------------------------------------------------------------
# Parameter construction (done ONCE at init; nothing here runs per forward)
# --------------------------------------------------------------------------
def prepare_params(weight_t, bias):
    """weight_t: (D, T) (transposed PyTorch weight), bias: (T,).

    Precomputes the lane-packed block-diagonal weight/bias (hoisted out of the
    per-call forward).  Tag axis is padded to the next power-of-two divisor of
    128 (zero weight columns, -1e30 bias) so padded lanes never affect the
    softmax and the output stores are fully lane-dense.
    """
    D, T = weight_t.shape
    params = {"weight_t": weight_t, "bias": bias}
    if T > _LANES:
        return params
    Tp = _next_pow2(T)
    assert (Tp & (Tp - 1)) == 0 and _LANES % Tp == 0  # butterfly needs pow2 segments
    P = _LANES // Tp
    wp_bytes = (P * D) * _LANES * weight_t.dtype.itemsize
    if wp_bytes > _MAX_PACKED_WEIGHT_BYTES:
        return params  # weight too big to hold resident in VMEM -> generic path
    w_pad = jnp.pad(weight_t, ((0, 0), (0, Tp - T)))
    b_pad = jnp.pad(bias, (0, Tp - T), constant_values=_NEG_INF)
    params["wp"] = jnp.kron(jnp.eye(P, dtype=weight_t.dtype), w_pad)  # (P*D, 128)
    params["bp"] = jnp.tile(b_pad, P).reshape(1, _LANES)              # (1, 128)
    return params


def init_params(key, w_rnn_units, tag_size):
    """Mirror the PyTorch module: xavier_uniform weight (T, D), zero bias."""
    fan_in, fan_out = w_rnn_units, tag_size
    limit = (6.0 / (fan_in + fan_out)) ** 0.5
    w = jax.random.uniform(
        key, (tag_size, w_rnn_units), jnp.float32, minval=-limit, maxval=limit)
    return prepare_params(w.T, jnp.zeros((tag_size,), jnp.float32))


# --------------------------------------------------------------------------
if __name__ == "__main__":
    key = jax.random.PRNGKey(0)
    k1, k2, k3, k4, k5, k6, k7, k8 = jax.random.split(key, 8)

    def reference(H, p):
        return jax.nn.log_softmax(H @ p["weight_t"] + p["bias"], axis=2)

    # 1) lane-packed path, T | 128 (batch=2, seq=8, hidden=32, tags=16)
    B, S, D, T = 2, 8, 32, 16
    H = jax.random.normal(k1, (B, S, D), jnp.float32)
    p = init_params(k2, D, T)
    out = indp_forward(H, p)
    jax.block_until_ready(out)
    assert out.shape == (B, S, T)
    assert jnp.allclose(out, reference(H, p), atol=1e-5), "packed path mismatch"

    # 2) generic fallback (rows not a multiple of the packing factor) + partial block
    B, S, D, T = 2, 5, 32, 20
    H = jax.random.normal(k3, (B, S, D), jnp.float32)
    p = init_params(k4, D, T)
    out = indp_forward(H, p)
    jax.block_until_ready(out)
    assert out.shape == (B, S, T)
    assert jnp.allclose(out, reference(H, p), atol=1e-5), "generic path mismatch"

    # 3) packed path with padded tag lanes (T=20 -> 32) and a partial last block
    B, S, D, T = 2, 52, 32, 20   # rows=104, P=4 -> groups=26, tile=16 -> grid=2
    H = jax.random.normal(k5, (B, S, D), jnp.float32)
    p = init_params(k6, D, T)
    out = indp_forward(H, p)
    jax.block_until_ready(out)
    assert out.shape == (B, S, T)
    assert jnp.allclose(out, reference(H, p), atol=1e-5), "padded-tag path mismatch"

    # 4) bf16 MXU operands (v5e option) -- looser tolerance
    B, S, D, T = 2, 8, 32, 16
    H = jax.random.normal(k7, (B, S, D), jnp.float32)
    p = init_params(k8, D, T)
    out = indp_forward(H, p, use_bf16_matmul=True)
    jax.block_until_ready(out)
    assert out.shape == (B, S, T)
    assert jnp.allclose(out, reference(H, p), atol=5e-2), "bf16 path mismatch"

    print("KERNEL_OK")
</pallas_src>

<mosaic_0001>
module attributes {stable_mosaic.version = 11 : i64} {
  func.func @_indp_packed_kernel(%arg0: i32, %arg1: memref<2x256xf32, #tpu.memory_space<vmem>>, %arg2: memref<256x128xf32, #tpu.memory_space<vmem>>, %arg3: memref<1x128xf32, #tpu.memory_space<vmem>>, %arg4: memref<2x128xf32, #tpu.memory_space<vmem>>) attributes {dimension_semantics = [#tpu.dimension_semantics<parallel>], iteration_bounds = array<i64: 1>, scalar_prefetch = 0 : i64, scratch_operands = 0 : i64, tpu.core_type = #tpu.core_type<tc>, window_params = [{transform_indices = @transform_0, window_bounds = array<i64: 2, 256>}, {pipeline_mode = #tpu.pipeline_mode<synchronous>, transform_indices = @transform_1, window_bounds = array<i64: 256, 128>}, {pipeline_mode = #tpu.pipeline_mode<synchronous>, transform_indices = @transform_2, window_bounds = array<i64: 1, 128>}, {transform_indices = @transform_3, window_bounds = array<i64: 2, 128>}]} {
    %c0 = arith.constant 0 : index
    %c0_0 = arith.constant 0 : index
    %0 = vector.load %arg1[%c0, %c0_0] : memref<2x256xf32, #tpu.memory_space<vmem>>, vector<2x256xf32>
    %c0_1 = arith.constant 0 : index
    %c0_2 = arith.constant 0 : index
    %1 = vector.load %arg2[%c0_1, %c0_2] : memref<256x128xf32, #tpu.memory_space<vmem>>, vector<256x128xf32>
    %cst = arith.constant dense<0.000000e+00> : vector<2x128xf32>
    %2 = tpu.matmul %0, %1, %cst {dimension_numbers = #tpu.dot_dimension_numbers<[1], [0], [0], [1], [0, 0, 1, 1], [], []>} : vector<2x256xf32>, vector<256x128xf32>, vector<2x128xf32> -> vector<2x128xf32>
    %c0_3 = arith.constant 0 : index
    %c0_4 = arith.constant 0 : index
    %3 = vector.load %arg3[%c0_3, %c0_4] : memref<1x128xf32, #tpu.memory_space<vmem>>, vector<1x128xf32>
    %4 = vector.broadcast %3 : vector<1x128xf32> to vector<2x128xf32>
    %5 = arith.addf %2, %4 : vector<2x128xf32>
    %6 = tpu.iota {dimensions = array<i32: 1>} : vector<2x128xi32>
    %c127_i32 = arith.constant 127 : i32
    %7 = tpu.dynamic_rotate %5 by %c127_i32 dim 1 : vector<2x128xf32>, i32 -> vector<2x128xf32>
    %c1_i32 = arith.constant 1 : i32
    %8 = tpu.dynamic_rotate %5 by %c1_i32 dim 1 : vector<2x128xf32>, i32 -> vector<2x128xf32>
    %c1_i32_5 = arith.constant 1 : i32
    %9 = vector.broadcast %c1_i32_5 : i32 to vector<2x128xi32>
    %10 = arith.andi %6, %9 : vector<2x128xi32>
    %c0_i32 = arith.constant 0 : i32
    %11 = vector.broadcast %c0_i32 : i32 to vector<2x128xi32>
    %12 = arith.cmpi eq, %10, %11 : vector<2x128xi32>
    %13 = arith.select %12, %7, %8 : vector<2x128xi1>, vector<2x128xf32>
    %14 = arith.maximumf %5, %13 : vector<2x128xf32>
    %c126_i32 = arith.constant 126 : i32
    %15 = tpu.dynamic_rotate %14 by %c126_i32 dim 1 : vector<2x128xf32>, i32 -> vector<2x128xf32>
    %c2_i32 = arith.constant 2 : i32
    %16 = tpu.dynamic_rotate %14 by %c2_i32 dim 1 : vector<2x128xf32>, i32 -> vector<2x128xf32>
    %c2_i32_6 = arith.constant 2 : i32
    %17 = vector.broadcast %c2_i32_6 : i32 to vector<2x128xi32>
    %18 = arith.andi %6, %17 : vector<2x128xi32>
    %c0_i32_7 = arith.constant 0 : i32
    %19 = vector.broadcast %c0_i32_7 : i32 to vector<2x128xi32>
    %20 = arith.cmpi eq, %18, %19 : vector<2x128xi32>
    %21 = arith.select %20, %15, %16 : vector<2x128xi1>, vector<2x128xf32>
    %22 = arith.maximumf %14, %21 : vector<2x128xf32>
    %c124_i32 = arith.constant 124 : i32
    %23 = tpu.dynamic_rotate %22 by %c124_i32 dim 1 : vector<2x128xf32>, i32 -> vector<2x128xf32>
    %c4_i32 = arith.constant 4 : i32
    %24 = tpu.dynamic_rotate %22 by %c4_i32 dim 1 : vector<2x128xf32>, i32 -> vector<2x128xf32>
    %c4_i32_8 = arith.constant 4 : i32
    %25 = vector.broadcast %c4_i32_8 : i32 to vector<2x128xi32>
    %26 = arith.andi %6, %25 : vector<2x128xi32>
    %c0_i32_9 = arith.constant 0 : i32
    %27 = vector.broadcast %c0_i32_9 : i32 to vector<2x128xi32>
    %28 = arith.cmpi eq, %26, %27 : vector<2x128xi32>
    %29 = arith.select %28, %23, %24 : vector<2x128xi1>, vector<2x128xf32>
    %30 = arith.maximumf %22, %29 : vector<2x128xf32>
    %c120_i32 = arith.constant 120 : i32
    %31 = tpu.dynamic_rotate %30 by %c120_i32 dim 1 : vector<2x128xf32>, i32 -> vector<2x128xf32>
    %c8_i32 = arith.constant 8 : i32
    %32 = tpu.dynamic_rotate %30 by %c8_i32 dim 1 : vector<2x128xf32>, i32 -> vector<2x128xf32>
    %c8_i32_10 = arith.constant 8 : i32
    %33 = vector.broadcast %c8_i32_10 : i32 to vector<2x128xi32>
    %34 = arith.andi %6, %33 : vector<2x128xi32>
    %c0_i32_11 = arith.constant 0 : i32
    %35 = vector.broadcast %c0_i32_11 : i32 to vector<2x128xi32>
    %36 = arith.cmpi eq, %34, %35 : vector<2x128xi32>
    %37 = arith.select %36, %31, %32 : vector<2x128xi1>, vector<2x128xf32>
    %38 = arith.maximumf %30, %37 : vector<2x128xf32>
    %39 = arith.subf %5, %38 : vector<2x128xf32>
    %40 = math.exp %39 : vector<2x128xf32>
    %c127_i32_12 = arith.constant 127 : i32
    %41 = tpu.dynamic_rotate %40 by %c127_i32_12 dim 1 : vector<2x128xf32>, i32 -> vector<2x128xf32>
    %c1_i32_13 = arith.constant 1 : i32
    %42 = tpu.dynamic_rotate %40 by %c1_i32_13 dim 1 : vector<2x128xf32>, i32 -> vector<2x128xf32>
    %c1_i32_14 = arith.constant 1 : i32
    %43 = vector.broadcast %c1_i32_14 : i32 to vector<2x128xi32>
    %44 = arith.andi %6, %43 : vector<2x128xi32>
    %c0_i32_15 = arith.constant 0 : i32
    %45 = vector.broadcast %c0_i32_15 : i32 to vector<2x128xi32>
    %46 = arith.cmpi eq, %44, %45 : vector<2x128xi32>
    %47 = arith.select %46, %41, %42 : vector<2x128xi1>, vector<2x128xf32>
    %48 = arith.addf %40, %47 : vector<2x128xf32>
    %c126_i32_16 = arith.constant 126 : i32
    %49 = tpu.dynamic_rotate %48 by %c126_i32_16 dim 1 : vector<2x128xf32>, i32 -> vector<2x128xf32>
    %c2_i32_17 = arith.constant 2 : i32
    %50 = tpu.dynamic_rotate %48 by %c2_i32_17 dim 1 : vector<2x128xf32>, i32 -> vector<2x128xf32>
    %c2_i32_18 = arith.constant 2 : i32
    %51 = vector.broadcast %c2_i32_18 : i32 to vector<2x128xi32>
    %52 = arith.andi %6, %51 : vector<2x128xi32>
    %c0_i32_19 = arith.constant 0 : i32
    %53 = vector.broadcast %c0_i32_19 : i32 to vector<2x128xi32>
    %54 = arith.cmpi eq, %52, %53 : vector<2x128xi32>
    %55 = arith.select %54, %49, %50 : vector<2x128xi1>, vector<2x128xf32>
    %56 = arith.addf %48, %55 : vector<2x128xf32>
    %c124_i32_20 = arith.constant 124 : i32
    %57 = tpu.dynamic_rotate %56 by %c124_i32_20 dim 1 : vector<2x128xf32>, i32 -> vector<2x128xf32>
    %c4_i32_21 = arith.constant 4 : i32
    %58 = tpu.dynamic_rotate %56 by %c4_i32_21 dim 1 : vector<2x128xf32>, i32 -> vector<2x128xf32>
    %c4_i32_22 = arith.constant 4 : i32
    %59 = vector.broadcast %c4_i32_22 : i32 to vector<2x128xi32>
    %60 = arith.andi %6, %59 : vector<2x128xi32>
    %c0_i32_23 = arith.constant 0 : i32
    %61 = vector.broadcast %c0_i32_23 : i32 to vector<2x128xi32>
    %62 = arith.cmpi eq, %60, %61 : vector<2x128xi32>
    %63 = arith.select %62, %57, %58 : vector<2x128xi1>, vector<2x128xf32>
    %64 = arith.addf %56, %63 : vector<2x128xf32>
    %c120_i32_24 = arith.constant 120 : i32
    %65 = tpu.dynamic_rotate %64 by %c120_i32_24 dim 1 : vector<2x128xf32>, i32 -> vector<2x128xf32>
    %c8_i32_25 = arith.constant 8 : i32
    %66 = tpu.dynamic_rotate %64 by %c8_i32_25 dim 1 : vector<2x128xf32>, i32 -> vector<2x128xf32>
    %c8_i32_26 = arith.constant 8 : i32
    %67 = vector.broadcast %c8_i32_26 : i32 to vector<2x128xi32>
    %68 = arith.andi %6, %67 : vector<2x128xi32>
    %c0_i32_27 = arith.constant 0 : i32
    %69 = vector.broadcast %c0_i32_27 : i32 to vector<2x128xi32>
    %70 = arith.cmpi eq, %68, %69 : vector<2x128xi32>
    %71 = arith.select %70, %65, %66 : vector<2x128xi1>, vector<2x128xf32>
    %72 = arith.addf %64, %71 : vector<2x128xf32>
    %73 = math.log %72 : vector<2x128xf32>
    %74 = arith.subf %39, %73 : vector<2x128xf32>
    %c0_28 = arith.constant 0 : index
    %c0_29 = arith.constant 0 : index
    %75 = vector.load %arg4[%c0_28, %c0_29] : memref<2x128xf32, #tpu.memory_space<vmem>>, vector<2x128xf32>
    tpu.vector_store %arg4[%c0_28, %c0_29], %74 {strides = array<i32>} : memref<2x128xf32, #tpu.memory_space<vmem>>, vector<2x128xf32>,
    return
  }
  func.func @transform_0(%arg0: i32) -> (i32, i32) {
    %c0_i32 = arith.constant 0 : i32
    %c0_i32_0 = arith.constant 0 : i32
    return %arg0, %c0_i32 : i32, i32
  }
  func.func @transform_1(%arg0: i32) -> (i32, i32) {
    %c0_i32 = arith.constant 0 : i32
    %c0_i32_0 = arith.constant 0 : i32
    %c0_i32_1 = arith.constant 0 : i32
    return %c0_i32, %c0_i32_0 : i32, i32
  }
  func.func @transform_2(%arg0: i32) -> (i32, i32) {
    %c0_i32 = arith.constant 0 : i32
    %c0_i32_0 = arith.constant 0 : i32
    %c0_i32_1 = arith.constant 0 : i32
    return %c0_i32, %c0_i32_0 : i32, i32
  }
  func.func @transform_3(%arg0: i32) -> (i32, i32) {
    %c0_i32 = arith.constant 0 : i32
    %c0_i32_0 = arith.constant 0 : i32
    return %arg0, %c0_i32 : i32, i32
  }
}

</mosaic_0001>

<bundles_post_ra>
// kernel: indp_forward.1
= control target key start
LH: loop header
LB: loop body
LE: loop exit
PB: predicated region body
PF: predicated region fallthrough
CT: control target
= control target key end

     0   :  { %8 = vsyncpa [#allocation3], 0  ;;  %s326_s12 = smov [#allocation2]   ;;  %s426_s0 = inlined_call_operand.vmem [shape: f32[2,256], index: 0, kind: input, shape index: {}]   ;;  %s427_s1 = inlined_call_operand.hbm [shape: f32[256,128], index: 1, kind: input, shape index: {}]   ;;  %s428_s2 = inlined_call_operand.vmem [shape: f32[1,128], index: 2, kind: input, shape index: {}]   ;;  %s429_s3 = inlined_call_operand.vmem [shape: f32[2,128], index: 3, kind: output, shape index: {}]  }
   0x1   :  { %s16_s13 = sshll.u32 %s326_s12, 4  ;;  %s302_s16 = scalar_lea.hbm %s427_s1, 4096  ;;  %s17_s13 = int_to_ptr.vmem [resolvable:$true] %s16_s13 }
   0x2   :  { %p303_p0 = scmp.ne.s32.totalorder %s427_s1, %s302_s16  ;;  %p306_p1 = scmp.lt.u32.totalorder %s302_s16, %s427_s1 }
   0x4   :  { %p308_p2 = pnand %p306_p1, %p303_p0 }
   0x6   :  { %311 = shalt.err (!%p308_p2)
}
   0x7   :  { %s312_s21 = scalar_lea.vmem %s17_s13, 4096  ;;  %p317_p4 = scmp.lt.s32.totalorder %s17_s13, %s17_s13 }
   0x8   :  { %p313_p3 = scmp.ne.s32.totalorder %s17_s13, %s312_s21  ;;  %p318_p5 = scmp.lt.s32.totalorder %s312_s21, %s312_s21 }
   0xa   :  { %p319_p6 = por %p318_p5, %p317_p4 }
   0xc   :  { %p320_p7 = pnand %p319_p6, %p313_p3 }
   0xe   :  { %323 = shalt.err (!%p320_p7)
}
   0xf   :  { %s327_s22 = smov 128   ;;  %s328_s23 = smov 8  }
  0x10   :  { %22 = dma.hbm_to_vmem [thread:$0]  %s427_s1, 4096, %s17_s13, [#allocation3], %s327_s22, %s327_s22, %s328_s23  }
  0x11   :  { %324 = dma.done.wait [#allocation3], 4096  }
  0x12   :  { %325 = vsyncadd [#allocation3], 4294963200  ;;  %v45_v0 = vld [vmem:[#allocation2 + $0x80] sm:$0xff]  ;;  %v46_v1 = vld [vmem:[#allocation2 + $0x88] sm:$0xff]  ;;  %s329_s28 = smov 127   ;;  %s330_s29 = smov 1   ;;  %v149_v55 = vlaneseq }
  0x13   :  { %v29_v2 = vld [vmem:[#allocation2] sm:$0xff]  ;;  %v256_v3 = vpack.c.bf16 %v46_v1, %v45_v0  ;;  %v30_v4 = vld [vmem:[#allocation2 + $0x8] sm:$0xff]  ;;  %v47_v5 = vld [vmem:[#allocation2 + $0x90] sm:$0xff]  ;;  %s332_s30 = smov 2   ;;  %s333_s4 = smov 4  }
  0x14   :  { %v48_v6 = vld [vmem:[#allocation2 + $0x98] sm:$0xff]  ;;  %v258_v7 = vpack.c.bf16 %v30_v4, %v29_v2  ;;  %v31_v9 = vld [vmem:[#allocation2 + $0x10] sm:$0xff]  ;;  %v49_v11 = vld [vmem:[#allocation2 + $0xa0] sm:$0xff]  ;;  %v150_v56 = vand.u32 127, %v149_v55  ;;  %s334_s5 = smov 124   ;;  %s335_s6 = smov 120  }
  0x15   :  { %v260_v8 = vpack.c.bf16 %v48_v6, %v47_v5  ;;  %v32_v10 = vld [vmem:[#allocation2 + $0x18] sm:$0xff]  ;;  %257 = vmatprep.subr.bf16.mxu0 %v256_v3  ;;  %v50_v12 = vld [vmem:[#allocation2 + $0xa8] sm:$0xff]  ;;  %v33_v15 = vld [vmem:[#allocation2 + $0x20] sm:$0xff] }
  0x16   :  { %259 = vmatpush3.bf16.msra.mxu0 %v258_v7  ;;  %v262_v13 = vpack.c.bf16 %v32_v10, %v31_v9  ;;  %v264_v14 = vpack.c.bf16 %v50_v12, %v49_v11  ;;  %v34_v16 = vld [vmem:[#allocation2 + $0x28] sm:$0xff]  ;;  %v51_v17 = vld [vmem:[#allocation2 + $0xb0] sm:$0xff]  ;;  %v52_v18 = vld [vmem:[#allocation2 + $0xb8] sm:$0xff]  ;;  %v155_v57 = vand.u32 1, %v150_v56  ;;  %v163_v63 = vand.u32 2, %v150_v56 }
  0x17   :  { %261 = vmatprep.subr.bf16.mxu0 %v260_v8  ;;  %v266_v19 = vpack.c.bf16 %v34_v16, %v33_v15  ;;  %v268_v20 = vpack.c.bf16 %v52_v18, %v51_v17  ;;  %v35_v21 = vld [vmem:[#allocation2 + $0x30] sm:$0xff]  ;;  %v36_v22 = vld [vmem:[#allocation2 + $0x38] sm:$0xff]  ;;  %v53_v23 = vld [vmem:[#allocation2 + $0xc0] sm:$0xff]  ;;  %v171_v5 = vand.u32 4, %v150_v56  ;;  %v179_v11 = vand.u32 8, %v150_v56 }
  0x18   :  { %v54_v24 = vld [vmem:[#allocation2 + $0xc8] sm:$0xff]  ;;  %v220_v25 = vld.sshfl [vmem:[%s426_s0] sm:$0x33 pattern:$0x76325410]  ;;  %v270_v27 = vpack.c.bf16 %v36_v22, %v35_v21  ;;  %v55_v31 = vld [vmem:[#allocation2 + $0xd0] sm:$0xff] }
  0x19   :  { %v76_v26 = vcombine.high %v220_v25, %v220_v25  ;;  %v272_v28 = vpack.c.bf16 %v54_v24, %v53_v23  ;;  %v37_v29 = vld [vmem:[#allocation2 + $0x40] sm:$0xff]  ;;  %v38_v30 = vld [vmem:[#allocation2 + $0x48] sm:$0xff]  ;;  %v56_v32 = vld [vmem:[#allocation2 + $0xd8] sm:$0xff]  ;;  %vm377_vm0 = vcmp.eq.s32.totalorder %v155_v57, 0  ;;  %vm385_vm1 = vcmp.eq.s32.totalorder %v163_v63, 0 }
  0x1a   :  { %263 = vmatpush3.bf16.msra.mxu0 %v262_v13  ;;  %v274_v33 = vpack.c.bf16 %v38_v30, %v37_v29  ;;  %v276_v34 = vpack.c.bf16 %v56_v32, %v55_v31  ;;  %v39_v35 = vld [vmem:[#allocation2 + $0x50] sm:$0xff]  ;;  %v40_v36 = vld [vmem:[#allocation2 + $0x58] sm:$0xff]  ;;  %v57_v37 = vld [vmem:[#allocation2 + $0xe0] sm:$0xff]  ;;  %vm393_vm2 = vcmp.eq.s32.totalorder %v171_v5, 0  ;;  %vm401_vm3 = vcmp.eq.s32.totalorder %v179_v11, 0 }
  0x1b   :  { %265 = vmatprep.subr.bf16.mxu0 %v264_v14  ;;  %143 = vmatprep.mubr.f32.mxu0 %v76_v26  ;;  %v58_v38 = vld [vmem:[#allocation2 + $0xe8] sm:$0xff]  ;;  %v278_v39 = vpack.c.bf16 %v40_v36, %v39_v35  ;;  %v41_v41 = vld [vmem:[#allocation2 + $0x60] sm:$0xff]  ;;  %v59_v43 = vld [vmem:[#allocation2 + $0xf0] sm:$0xff] }
  0x1c   :  { %v280_v40 = vpack.c.bf16 %v58_v38, %v57_v37  ;;  %v42_v42 = vld [vmem:[#allocation2 + $0x68] sm:$0xff]  ;;  %v60_v44 = vld [vmem:[#allocation2 + $0xf8] sm:$0xff]  ;;  %v43_v47 = vld [vmem:[#allocation2 + $0x70] sm:$0xff] }
  0x1d   :  { %v282_v45 = vpack.c.bf16 %v42_v42, %v41_v41  ;;  %v284_v46 = vpack.c.bf16 %v60_v44, %v59_v43  ;;  %v44_v48 = vld [vmem:[#allocation2 + $0x78] sm:$0xff]  ;;  %v219_v51 = vld [vmem:[%s428_s2] ss:$0 sm:$0xff]  ;;  %s331_s2 = smov 126  }
  0x1e   :  { %267 = vmatpush3.bf16.msra.mxu0 %v266_v19  ;;  %v286_v49 = vpack.c.bf16 %v44_v48, %v43_v47 }
  0x1f   :  { %269 = vmatprep.subr.bf16.mxu0 %v268_v20 }
  0x22   :  { %271 = vmatpush3.bf16.msra.mxu0 %v270_v27 }
  0x23   :  { %273 = vmatprep.subr.bf16.mxu0 %v272_v28 }
  0x26   :  { %275 = vmatpush3.bf16.msra.mxu0 %v274_v33 }
  0x27   :  { %277 = vmatprep.subr.bf16.mxu0 %v276_v34 }
  0x2a   :  { %279 = vmatpush3.bf16.msra.mxu0 %v278_v39 }
  0x2b   :  { %281 = vmatprep.subr.bf16.mxu0 %v280_v40 }
  0x2e   :  { %283 = vmatpush3.bf16.msra.mxu0 %v282_v45 }
  0x2f   :  { %285 = vmatprep.subr.bf16.mxu0 %v284_v46 }
  0x32   :  { %287 = vmatpush3.bf16.msra.mxu0 %v286_v49 }
  0x35   :  { %144 = vmatmul.mubr.f32.vlgmr.msra.gmra.mrb[0].mxu0 %v220_v25 }
 0x108   :  { %v253_v50 = vpop.f32.mrb[0].mxu0 }
 0x109   :  { %v254_v52 = vpop.f32.mrb[1].mxu0 }
 0x10a   :  { %v255_v53 = vadd.f32 %v254_v52, %v253_v50 }
 0x10c   :  { %v146_v54 = vadd.f32 %v255_v53, %v219_v51 }
 0x10e   :  { %151 = vrot.lane.b32.xlu0 %v146_v54, %s329_s28 }
 0x112   :  { %153 = vrot.lane.b32.xlu0 %v146_v54, %s330_s29 }
 0x180   :  { %v152_v58 = vpop.permute.xlu0 %151 }
 0x184   :  { %v154_v60 = vpop.permute.xlu0 %153 }
 0x185   :  { %v157_v61 = vsel %vm377_vm0, %v152_v58, %v154_v60 }
 0x186   :  { %v158_v62 = vmax.f32 %v146_v54, %v157_v61 }
 0x188   :  { %159 = vrot.lane.b32.xlu1 %v158_v62, %s331_s2 }
 0x18c   :  { %161 = vrot.lane.b32.xlu1 %v158_v62, %s332_s30 }
 0x1fa   :  { %v160_v0 = vpop.permute.xlu1 %159 }
 0x1fe   :  { %v162_v2 = vpop.permute.xlu1 %161 }
 0x1ff   :  { %v165_v3 = vsel %vm385_vm1, %v160_v0, %v162_v2 }
 0x200   :  { %v166_v4 = vmax.f32 %v158_v62, %v165_v3 }
 0x202   :  { %169 = vrot.lane.b32.xlu1 %v166_v4, %s333_s4  ;;  %167 = vrot.lane.b32.xlu0 %v166_v4, %s334_s5 }
 0x274   :  { %v170_v7 = vpop.permute.xlu1 %169  ;;  %v168_v8 = vpop.permute.xlu0 %167 }
 0x275   :  { %v173_v9 = vsel %vm393_vm2, %v168_v8, %v170_v7 }
 0x276   :  { %v174_v10 = vmax.f32 %v166_v4, %v173_v9 }
 0x278   :  { %177 = vrot.lane.b32.xlu1 %v174_v10, %s328_s23  ;;  %175 = vrot.lane.b32.xlu0 %v174_v10, %s335_s6 }
 0x2ea   :  { %v178_v13 = vpop.permute.xlu1 %177  ;;  %v176_v14 = vpop.permute.xlu0 %175 }
 0x2eb   :  { %v181_v15 = vsel %vm401_vm3, %v176_v14, %v178_v13 }
 0x2ec   :  { %v182_v16 = vmax.f32 %v174_v10, %v181_v15 }
 0x2ee   :  { %v183_v17 = vsub.f32 %v146_v54, %v182_v16 }
 0x2f0   :  { %v184_v18 = vmul.f32 1.442695, %v183_v17 }
 0x2f2   :  { %298 = vpow2.f32 %v184_v18 }
 0x2fc   :  { %v299_v19 = vpop.eup %298 }
 0x2fd   :  { %188 = vrot.lane.b32.xlu1 %v299_v19, %s330_s29  ;;  %186 = vrot.lane.b32.xlu0 %v299_v19, %s329_s28 }
 0x36f   :  { %v189_v20 = vpop.permute.xlu1 %188  ;;  %v187_v21 = vpop.permute.xlu0 %186 }
 0x370   :  { %v190_v22 = vsel %vm377_vm0, %v187_v21, %v189_v20 }
 0x371   :  { %v191_v23 = vadd.f32 %v299_v19, %v190_v22 }
 0x373   :  { %194 = vrot.lane.b32.xlu1 %v191_v23, %s332_s30  ;;  %192 = vrot.lane.b32.xlu0 %v191_v23, %s331_s2 }
 0x3e5   :  { %v195_v24 = vpop.permute.xlu1 %194  ;;  %v193_v25 = vpop.permute.xlu0 %192 }
 0x3e6   :  { %v196_v26 = vsel %vm385_vm1, %v193_v25, %v195_v24 }
 0x3e7   :  { %v197_v27 = vadd.f32 %v196_v26, %v191_v23 }
 0x3e9   :  { %200 = vrot.lane.b32.xlu1 %v197_v27, %s333_s4  ;;  %198 = vrot.lane.b32.xlu0 %v197_v27, %s334_s5 }
 0x45b   :  { %v201_v28 = vpop.permute.xlu1 %200  ;;  %v199_v29 = vpop.permute.xlu0 %198 }
 0x45c   :  { %v202_v30 = vsel %vm393_vm2, %v199_v29, %v201_v28 }
 0x45d   :  { %v203_v31 = vadd.f32 %v202_v30, %v197_v27 }
 0x45f   :  { %206 = vrot.lane.b32.xlu1 %v203_v31, %s328_s23  ;;  %204 = vrot.lane.b32.xlu0 %v203_v31, %s335_s6 }
 0x4d1   :  { %v207_v32 = vpop.permute.xlu1 %206  ;;  %v205_v33 = vpop.permute.xlu0 %204 }
 0x4d2   :  { %v208_v34 = vsel %vm401_vm3, %v205_v33, %v207_v32 }
 0x4d3   :  { %v209_v35 = vadd.f32 %v208_v34, %v203_v31 }
 0x4d5   :  { %300 = vlog2.f32 %v209_v35 }
 0x4df   :  { %v301_v36 = vpop.eup %300 }
 0x4e0   :  { %v211_v37 = vmul.f32 0.6931472, %v301_v36 }
 0x4e2   :  { %v212_v38 = vsub.f32 %v183_v17, %v211_v37 }
 0x4e4   :  { %213 = vst [vmem:[%s429_s3] sm:$0x3] %v212_v38 }
 0x4e5   :  { %218 = vsyncpa [#allocation3], 1 }

</bundles_post_ra>
